<compile_context>
chip_gen: v7x
topology: tpu7x:2x2x1
jax: 0.10.0
libtpu: 0.0.40
codegen_flags: <defaults>
</compile_context>

<pallas_src>
import jax
import jax.numpy as jnp
from jax.experimental import pallas as pl
from jax.experimental.pallas import tpu as pltpu

LAM = 0.1  # module default lam=0.1 (no learnable parameters)


# --------------------------------------------------------------------------
# Hardware queries (generation-aware budgets).
# --------------------------------------------------------------------------
def _vmem_budget_bytes():
    """Returns (pipelined working-set budget, physical VMEM bytes)."""
    phys = None
    try:
        info = pltpu.get_tpu_info()
        phys = int(getattr(info, "vmem_capacity_bytes", 0)) or None
    except Exception:
        phys = None
    if phys is None:
        kind = ""
        try:
            kind = (jax.devices()[0].device_kind or "").lower()
        except Exception:
            pass
        if "v7" in kind:
            phys = 64 << 20        # v7x: 64 MiB per TensorCore
        elif "v5" in kind or "v6" in kind:
            phys = 128 << 20       # v5e / v6e: 128 MiB
        else:
            phys = 64 << 20        # conservative default
    # Keep the double-buffered working set well under physical VMEM.
    return int(phys * 0.45), phys


def _num_tensorcores():
    """v7x has two TensorCores per chip; v5e/v6e have one."""
    try:
        kind = (jax.devices()[0].device_kind or "").lower()
        if "v7" in kind:
            return 2
    except Exception:
        pass
    return 1


# --------------------------------------------------------------------------
# Tiling heuristic.
# --------------------------------------------------------------------------
def _pick_rows_per_tile(B, N, in_itemsizes, budget):
    """Largest row tile whose pipelined working set fits `budget`.

    Working set per row: three double-buffered native input tiles plus
    ~6 tile-sized f32 intermediates (delta / resid / x / xsq / x*y / y*y).
    Never falls back to the whole batch when it does not fit: clamps to a
    multiple of 8 and lets vmem_limit_bytes absorb the remainder.
    """
    per_row = 2 * N * sum(in_itemsizes) + 6 * N * 4
    max_rows = max(1, budget // per_row)

    if B <= max_rows:
        tb = B
        # Even when the whole batch fits, split big problems into several row
        # tiles so the BlockSpec pipeline overlaps DMA with compute.
        if B >= 32 and B * per_row > (8 << 20):
            tgt = max(8, ((B // 8) // 8) * 8)   # ~8 tiles, multiple of 8
            tb = min(B, tgt)
        return tb, per_row

    tb = (max_rows // 8) * 8
    if tb == 0:
        # A single 8-row tile already exceeds the budget (very large images):
        # clamp to 8 rows and raise the VMEM limit in the wrapper.
        # TODO(synk): add a column-tiled two-phase path (alpha sweep, then
        # moment sweep over N tiles) for the huge-N / small-B regime so the
        # VMEM footprint stays bounded on v7x.
        tb = 8 if B >= 8 else B
    return min(tb, B), per_row


# --------------------------------------------------------------------------
# Kernel.
# --------------------------------------------------------------------------
def _make_kernel(B, N, tb, spc, needs_mask):
    inv_n = 1.0 / float(N)

    def kernel(pred_ref, target_ref, unc_ref,            # inputs  (tb, N)
               srow_ref, sx_ref, sy_ref, sxy_ref, sxx_ref, syy_ref):  # outputs (tb, 1)
        c = pl.program_id(0)          # core slot (parallel axis)
        s = pl.program_id(1)          # row-tile step within this core (reduction axis)

        @pl.when(s == 0)
        def _init():
            zero = jnp.zeros_like(srow_ref)
            srow_ref[...] = zero
            sx_ref[...] = zero
            sy_ref[...] = zero
            sxy_ref[...] = zero
            sxx_ref[...] = zero
            syy_ref[...] = zero

        eps = jnp.float32(1e-8)

        y = unc_ref[...].astype(jnp.float32)              # (tb, N)
        p = pred_ref[...].astype(jnp.float32)             # (tb, N)
        t = target_ref[...].astype(jnp.float32)           # (tb, N)

        if needs_mask:
            # Rows past B (tail tile and/or fully-padded steps) contribute 0.
            row0 = (c * spc + s) * tb
            rid = row0 + jax.lax.broadcasted_iota(jnp.int32, (tb, 1), 0)
            valid = rid < B                                # (tb, 1) bool
            y = jnp.where(valid, y, jnp.float32(0.0))
            p = jnp.where(valid, p, jnp.float32(1.0))      # keep logs finite
            t = jnp.where(valid, t, jnp.float32(1.0))

        # Retire the uncertainty moments first (shortens the y*y live range).
        sy_ref[...] += jnp.sum(y, axis=1, keepdims=True)
        syy_ref[...] += jnp.sum(y * y, axis=1, keepdims=True)

        # Scale-invariant residual (two logs: no ratio overflow, matches ref).
        delta = jnp.log(t + eps) - jnp.log(p + eps)
        alpha = jnp.sum(delta, axis=1, keepdims=True) * jnp.float32(inv_n)
        resid = alpha - delta
        # sqrt(clamp_min(resid^2, 1e-12)) == max(|resid|, 1e-6)
        x = jnp.maximum(jnp.abs(resid), jnp.float32(1e-6))
        if needs_mask:
            x = jnp.where(valid, x, jnp.float32(0.0))
        xsq = x * x                                        # == clamp_min(resid^2, 1e-12)

        # Reuse the per-row xsq sum for both Sxx and the per-row RMSE.
        rowsum_xsq = jnp.sum(xsq, axis=1, keepdims=True)   # (tb, 1)
        sxx_ref[...] += rowsum_xsq
        srow_ref[...] += jnp.sqrt(rowsum_xsq * jnp.float32(inv_n))
        sx_ref[...] += jnp.sum(x, axis=1, keepdims=True)
        sxy_ref[...] += jnp.sum(x * y, axis=1, keepdims=True)
        # TODO(synk): on v7x, the four non-structural moment sums could be
        # offloaded to the idle MXU via a (N x 128) selection-matrix dot to
        # trim VALU work further.

    return kernel


# --------------------------------------------------------------------------
# Wrapper.
# --------------------------------------------------------------------------
def sirmse_correlation(pred, target, uncertainty, lam=LAM,
                       rows_per_tile=None, force_cores=None):
    """pred/target/uncertainty: (B, C, H, W) (C expected 1). Returns
    (loss, sirmse, correlation) scalars, matching the PyTorch forward."""
    B = pred.shape[0]
    # Row-major flatten == torch .squeeze().view(B, -1) element order (B>1).
    pred_flat = pred.reshape(B, -1)
    target_flat = target.reshape(B, -1)
    unc_flat = uncertainty.reshape(B, -1)
    N = pred_flat.shape[1]

    budget, phys = _vmem_budget_bytes()
    itemsizes = [jnp.dtype(a.dtype).itemsize
                 for a in (pred_flat, target_flat, unc_flat)]
    tb, per_row = _pick_rows_per_tile(B, N, itemsizes, budget)
    if rows_per_tile is not None:
        tb = int(rows_per_tile)

    n_tiles = pl.cdiv(B, tb)
    ncores = _num_tensorcores() if force_cores is None else int(force_cores)
    if not (n_tiles >= 2 and tb % 8 == 0):
        ncores = 1                         # splitting only valid/worth it then
    spc = pl.cdiv(n_tiles, ncores)         # row-tile steps per core
    needs_mask = (ncores * spc * tb != B)

    kernel = _make_kernel(B=B, N=N, tb=tb, spc=spc, needs_mask=needs_mask)

    def in_index(c, s):
        # Clamp fully-padded trailing steps onto the last valid tile (their
        # contribution is masked to zero in the kernel).
        return (jnp.minimum(c * spc + s, n_tiles - 1), 0)

    in_spec = pl.BlockSpec((tb, N), in_index)
    out_spec = pl.BlockSpec((tb, 1), lambda c, s: (c, 0))   # per-core slot, resident over s
    mom_shape = jax.ShapeDtypeStruct((ncores * tb, 1), jnp.float32)

    vmem_limit = int(min(phys, max(int(1.5 * tb * per_row) + (4 << 20), 32 << 20)))

    srow, sx, sy, sxy, sxx, syy = pl.pallas_call(
        kernel,
        out_shape=(mom_shape,) * 6,
        grid_spec=pltpu.PrefetchScalarGridSpec(
            num_scalar_prefetch=0,
            grid=(ncores, spc),
            in_specs=[in_spec, in_spec, in_spec],
            out_specs=(out_spec,) * 6,
        ),
        compiler_params=pltpu.CompilerParams(
            dimension_semantics=("parallel", "arbitrary"),
            vmem_limit_bytes=vmem_limit),
    )(pred_flat, target_flat, unc_flat)

    # Tiny epilogue: combine the per-core / per-row-slot partial moments.
    srow = jnp.sum(srow)
    sx = jnp.sum(sx)
    sy = jnp.sum(sy)
    sxy = jnp.sum(sxy)
    sxx = jnp.sum(sxx)
    syy = jnp.sum(syy)

    m = jnp.float32(B * N)
    sirmse = srow / jnp.float32(B)
    cov = sxy - sx * sy / m
    varx = sxx - sx * sx / m
    vary = syy - sy * sy / m
    corr = cov * jax.lax.rsqrt(varx * vary)
    loss = (1.0 - float(lam)) * sirmse + float(lam) * (1.0 - corr)
    return loss, sirmse, corr


# --------------------------------------------------------------------------
# Pure-JAX reference (centered Pearson, mirrors the PyTorch forward).
# --------------------------------------------------------------------------
def _reference(pred, target, uncertainty, lam=LAM):
    B = pred.shape[0]
    pf = pred.reshape(B, -1).astype(jnp.float32)
    tf = target.reshape(B, -1).astype(jnp.float32)
    unc = uncertainty.reshape(-1).astype(jnp.float32)
    delta = jnp.log(tf + 1e-8) - jnp.log(pf + 1e-8)
    alpha = jnp.mean(delta, axis=1, keepdims=True)
    resid_sq = jnp.maximum((-delta + alpha) ** 2, 1e-12)
    sirmse_pixel = jnp.sqrt(resid_sq).reshape(-1)
    sirmse = jnp.mean(jnp.sqrt(jnp.mean(resid_sq, axis=1)))
    x = sirmse_pixel - jnp.mean(sirmse_pixel)
    y = unc - jnp.mean(unc)
    corr = jnp.sum(x * y) / jnp.sqrt(jnp.sum(x * x) * jnp.sum(y * y))
    loss = (1 - lam) * sirmse + lam * (1 - corr)
    return loss, sirmse, corr


def _check(got, ref, rtols=(1e-4, 1e-4, 1e-4), atols=(1e-5, 1e-5, 1e-4)):
    for g, r, rt, at in zip(got, ref, rtols, atols):
        assert jnp.allclose(g, r, rtol=rt, atol=at), (g, r)


if __name__ == "__main__":
    key = jax.random.PRNGKey(0)

    # Case 1: small canonical shape, single tile, single core slot.
    k1, k2, k3 = jax.random.split(key, 3)
    B, C, H, W = 2, 1, 16, 16
    pred = jax.random.uniform(k1, (B, C, H, W), jnp.float32, minval=0.1, maxval=2.0)
    target = jax.random.uniform(k2, (B, C, H, W), jnp.float32, minval=0.1, maxval=2.0)
    unc = jax.random.uniform(k3, (B, C, H, W), jnp.float32, minval=0.0, maxval=1.0)

    out = sirmse_correlation(pred, target, unc)
    jax.block_until_ready(out)
    _check(out, _reference(pred, target, unc))

    # Case 2: exercise the tiled + masked tail path (B not a multiple of tb)
    # and the per-core partial-combine path (2 core slots, correct on 1-TC
    # chips too — each slot just runs sequentially).
    k4, k5, k6 = jax.random.split(jax.random.PRNGKey(0), 3)
    B2 = 20
    pred2 = jax.random.uniform(k4, (B2, 1, 16, 16), jnp.float32, minval=0.1, maxval=2.0)
    target2 = jax.random.uniform(k5, (B2, 1, 16, 16), jnp.float32, minval=0.1, maxval=2.0)
    unc2 = jax.random.uniform(k6, (B2, 1, 16, 16), jnp.float32, minval=0.0, maxval=1.0)

    out2 = sirmse_correlation(pred2, target2, unc2, rows_per_tile=8, force_cores=2)
    jax.block_until_ready(out2)
    _check(out2, _reference(pred2, target2, unc2))

    print("KERNEL_OK")
</pallas_src>

<mosaic_0001>
module attributes {stable_mosaic.version = 11 : i64} {
  func.func @kernel(%arg0: i32, %arg1: i32, %arg2: memref<2x256xf32, #tpu.memory_space<vmem>>, %arg3: memref<2x256xf32, #tpu.memory_space<vmem>>, %arg4: memref<2x256xf32, #tpu.memory_space<vmem>>, %arg5: memref<2x1xf32, #tpu.memory_space<vmem>>, %arg6: memref<2x1xf32, #tpu.memory_space<vmem>>, %arg7: memref<2x1xf32, #tpu.memory_space<vmem>>, %arg8: memref<2x1xf32, #tpu.memory_space<vmem>>, %arg9: memref<2x1xf32, #tpu.memory_space<vmem>>, %arg10: memref<2x1xf32, #tpu.memory_space<vmem>>) attributes {dimension_semantics = [#tpu.dimension_semantics<parallel>, #tpu.dimension_semantics<arbitrary>], iteration_bounds = array<i64: 1, 1>, scalar_prefetch = 0 : i64, scratch_operands = 0 : i64, tpu.core_type = #tpu.core_type<tc>, window_params = [{transform_indices = @transform_0, window_bounds = array<i64: 2, 256>}, {transform_indices = @transform_1, window_bounds = array<i64: 2, 256>}, {transform_indices = @transform_2, window_bounds = array<i64: 2, 256>}, {transform_indices = @transform_3, window_bounds = array<i64: 2, 1>}, {transform_indices = @transform_4, window_bounds = array<i64: 2, 1>}, {transform_indices = @transform_5, window_bounds = array<i64: 2, 1>}, {transform_indices = @transform_6, window_bounds = array<i64: 2, 1>}, {transform_indices = @transform_7, window_bounds = array<i64: 2, 1>}, {transform_indices = @transform_8, window_bounds = array<i64: 2, 1>}]} {
    %c0_i32 = arith.constant 0 : i32
    %0 = arith.cmpi eq, %arg1, %c0_i32 : i32
    %1 = arith.extui %0 : i1 to i32
    %c0_i32_0 = arith.constant 0 : i32
    %2 = arith.cmpi ne, %1, %c0_i32_0 : i32
    scf.if %2 {
      %cst_40 = arith.constant 0.000000e+00 : f32
      %56 = vector.broadcast %cst_40 : f32 to vector<2x1xf32>
      %c0_41 = arith.constant 0 : index
      %c0_42 = arith.constant 0 : index
      %57 = vector.load %arg5[%c0_41, %c0_42] : memref<2x1xf32, #tpu.memory_space<vmem>>, vector<2x1xf32>
      tpu.vector_store %arg5[%c0_41, %c0_42], %56 {strides = array<i32>} : memref<2x1xf32, #tpu.memory_space<vmem>>, vector<2x1xf32>,
      %c0_43 = arith.constant 0 : index
      %c0_44 = arith.constant 0 : index
      %58 = vector.load %arg6[%c0_43, %c0_44] : memref<2x1xf32, #tpu.memory_space<vmem>>, vector<2x1xf32>
      tpu.vector_store %arg6[%c0_43, %c0_44], %56 {strides = array<i32>} : memref<2x1xf32, #tpu.memory_space<vmem>>, vector<2x1xf32>,
      %c0_45 = arith.constant 0 : index
      %c0_46 = arith.constant 0 : index
      %59 = vector.load %arg7[%c0_45, %c0_46] : memref<2x1xf32, #tpu.memory_space<vmem>>, vector<2x1xf32>
      tpu.vector_store %arg7[%c0_45, %c0_46], %56 {strides = array<i32>} : memref<2x1xf32, #tpu.memory_space<vmem>>, vector<2x1xf32>,
      %c0_47 = arith.constant 0 : index
      %c0_48 = arith.constant 0 : index
      %60 = vector.load %arg8[%c0_47, %c0_48] : memref<2x1xf32, #tpu.memory_space<vmem>>, vector<2x1xf32>
      tpu.vector_store %arg8[%c0_47, %c0_48], %56 {strides = array<i32>} : memref<2x1xf32, #tpu.memory_space<vmem>>, vector<2x1xf32>,
      %c0_49 = arith.constant 0 : index
      %c0_50 = arith.constant 0 : index
      %61 = vector.load %arg9[%c0_49, %c0_50] : memref<2x1xf32, #tpu.memory_space<vmem>>, vector<2x1xf32>
      tpu.vector_store %arg9[%c0_49, %c0_50], %56 {strides = array<i32>} : memref<2x1xf32, #tpu.memory_space<vmem>>, vector<2x1xf32>,
      %c0_51 = arith.constant 0 : index
      %c0_52 = arith.constant 0 : index
      %62 = vector.load %arg10[%c0_51, %c0_52] : memref<2x1xf32, #tpu.memory_space<vmem>>, vector<2x1xf32>
      tpu.vector_store %arg10[%c0_51, %c0_52], %56 {strides = array<i32>} : memref<2x1xf32, #tpu.memory_space<vmem>>, vector<2x1xf32>,
    } else {
    }
    %c0 = arith.constant 0 : index
    %c0_1 = arith.constant 0 : index
    %3 = vector.load %arg4[%c0, %c0_1] : memref<2x256xf32, #tpu.memory_space<vmem>>, vector<2x256xf32>
    %c0_2 = arith.constant 0 : index
    %c0_3 = arith.constant 0 : index
    %4 = vector.load %arg2[%c0_2, %c0_3] : memref<2x256xf32, #tpu.memory_space<vmem>>, vector<2x256xf32>
    %c0_4 = arith.constant 0 : index
    %c0_5 = arith.constant 0 : index
    %5 = vector.load %arg3[%c0_4, %c0_5] : memref<2x256xf32, #tpu.memory_space<vmem>>, vector<2x256xf32>
    %c0_6 = arith.constant 0 : index
    %c0_7 = arith.constant 0 : index
    %6 = vector.load %arg7[%c0_6, %c0_7] : memref<2x1xf32, #tpu.memory_space<vmem>>, vector<2x1xf32>
    %cst = arith.constant dense<0.000000e+00> : vector<2xf32>
    %7 = vector.multi_reduction <add>, %3, %cst [1] : vector<2x256xf32> to vector<2xf32>
    %8 = vector.shape_cast %7 : vector<2xf32> to vector<2x1xf32>
    %9 = arith.addf %6, %8 : vector<2x1xf32>
    %c0_8 = arith.constant 0 : index
    %c0_9 = arith.constant 0 : index
    %10 = vector.load %arg7[%c0_8, %c0_9] : memref<2x1xf32, #tpu.memory_space<vmem>>, vector<2x1xf32>
    tpu.vector_store %arg7[%c0_8, %c0_9], %9 {strides = array<i32>} : memref<2x1xf32, #tpu.memory_space<vmem>>, vector<2x1xf32>,
    %c0_10 = arith.constant 0 : index
    %c0_11 = arith.constant 0 : index
    %11 = vector.load %arg10[%c0_10, %c0_11] : memref<2x1xf32, #tpu.memory_space<vmem>>, vector<2x1xf32>
    %12 = arith.mulf %3, %3 : vector<2x256xf32>
    %cst_12 = arith.constant dense<0.000000e+00> : vector<2xf32>
    %13 = vector.multi_reduction <add>, %12, %cst_12 [1] : vector<2x256xf32> to vector<2xf32>
    %14 = vector.shape_cast %13 : vector<2xf32> to vector<2x1xf32>
    %15 = arith.addf %11, %14 : vector<2x1xf32>
    %c0_13 = arith.constant 0 : index
    %c0_14 = arith.constant 0 : index
    %16 = vector.load %arg10[%c0_13, %c0_14] : memref<2x1xf32, #tpu.memory_space<vmem>>, vector<2x1xf32>
    tpu.vector_store %arg10[%c0_13, %c0_14], %15 {strides = array<i32>} : memref<2x1xf32, #tpu.memory_space<vmem>>, vector<2x1xf32>,
    %cst_15 = arith.constant 9.99999993E-9 : f32
    %17 = vector.broadcast %cst_15 : f32 to vector<2x256xf32>
    %18 = arith.addf %5, %17 : vector<2x256xf32>
    %19 = math.log %18 : vector<2x256xf32>
    %cst_16 = arith.constant 9.99999993E-9 : f32
    %20 = vector.broadcast %cst_16 : f32 to vector<2x256xf32>
    %21 = arith.addf %4, %20 : vector<2x256xf32>
    %22 = math.log %21 : vector<2x256xf32>
    %23 = arith.subf %19, %22 : vector<2x256xf32>
    %cst_17 = arith.constant dense<0.000000e+00> : vector<2xf32>
    %24 = vector.multi_reduction <add>, %23, %cst_17 [1] : vector<2x256xf32> to vector<2xf32>
    %25 = vector.shape_cast %24 : vector<2xf32> to vector<2x1xf32>
    %cst_18 = arith.constant 3.906250e-03 : f32
    %26 = vector.broadcast %cst_18 : f32 to vector<2x1xf32>
    %27 = arith.mulf %25, %26 : vector<2x1xf32>
    %28 = vector.broadcast %27 : vector<2x1xf32> to vector<2x256xf32>
    %29 = arith.subf %28, %23 : vector<2x256xf32>
    %30 = math.absf %29 : vector<2x256xf32>
    %cst_19 = arith.constant 9.99999997E-7 : f32
    %31 = vector.broadcast %cst_19 : f32 to vector<2x256xf32>
    %32 = arith.maximumf %30, %31 : vector<2x256xf32>
    %33 = arith.mulf %32, %32 : vector<2x256xf32>
    %cst_20 = arith.constant dense<0.000000e+00> : vector<2xf32>
    %34 = vector.multi_reduction <add>, %33, %cst_20 [1] : vector<2x256xf32> to vector<2xf32>
    %35 = vector.shape_cast %34 : vector<2xf32> to vector<2x1xf32>
    %c0_21 = arith.constant 0 : index
    %c0_22 = arith.constant 0 : index
    %36 = vector.load %arg9[%c0_21, %c0_22] : memref<2x1xf32, #tpu.memory_space<vmem>>, vector<2x1xf32>
    %37 = arith.addf %36, %35 : vector<2x1xf32>
    %c0_23 = arith.constant 0 : index
    %c0_24 = arith.constant 0 : index
    %38 = vector.load %arg9[%c0_23, %c0_24] : memref<2x1xf32, #tpu.memory_space<vmem>>, vector<2x1xf32>
    tpu.vector_store %arg9[%c0_23, %c0_24], %37 {strides = array<i32>} : memref<2x1xf32, #tpu.memory_space<vmem>>, vector<2x1xf32>,
    %c0_25 = arith.constant 0 : index
    %c0_26 = arith.constant 0 : index
    %39 = vector.load %arg5[%c0_25, %c0_26] : memref<2x1xf32, #tpu.memory_space<vmem>>, vector<2x1xf32>
    %cst_27 = arith.constant 3.906250e-03 : f32
    %40 = vector.broadcast %cst_27 : f32 to vector<2x1xf32>
    %41 = arith.mulf %35, %40 : vector<2x1xf32>
    %42 = math.sqrt %41 : vector<2x1xf32>
    %43 = arith.addf %39, %42 : vector<2x1xf32>
    %c0_28 = arith.constant 0 : index
    %c0_29 = arith.constant 0 : index
    %44 = vector.load %arg5[%c0_28, %c0_29] : memref<2x1xf32, #tpu.memory_space<vmem>>, vector<2x1xf32>
    tpu.vector_store %arg5[%c0_28, %c0_29], %43 {strides = array<i32>} : memref<2x1xf32, #tpu.memory_space<vmem>>, vector<2x1xf32>,
    %c0_30 = arith.constant 0 : index
    %c0_31 = arith.constant 0 : index
    %45 = vector.load %arg6[%c0_30, %c0_31] : memref<2x1xf32, #tpu.memory_space<vmem>>, vector<2x1xf32>
    %cst_32 = arith.constant dense<0.000000e+00> : vector<2xf32>
    %46 = vector.multi_reduction <add>, %32, %cst_32 [1] : vector<2x256xf32> to vector<2xf32>
    %47 = vector.shape_cast %46 : vector<2xf32> to vector<2x1xf32>
    %48 = arith.addf %45, %47 : vector<2x1xf32>
    %c0_33 = arith.constant 0 : index
    %c0_34 = arith.constant 0 : index
    %49 = vector.load %arg6[%c0_33, %c0_34] : memref<2x1xf32, #tpu.memory_space<vmem>>, vector<2x1xf32>
    tpu.vector_store %arg6[%c0_33, %c0_34], %48 {strides = array<i32>} : memref<2x1xf32, #tpu.memory_space<vmem>>, vector<2x1xf32>,
    %c0_35 = arith.constant 0 : index
    %c0_36 = arith.constant 0 : index
    %50 = vector.load %arg8[%c0_35, %c0_36] : memref<2x1xf32, #tpu.memory_space<vmem>>, vector<2x1xf32>
    %51 = arith.mulf %32, %3 : vector<2x256xf32>
    %cst_37 = arith.constant dense<0.000000e+00> : vector<2xf32>
    %52 = vector.multi_reduction <add>, %51, %cst_37 [1] : vector<2x256xf32> to vector<2xf32>
    %53 = vector.shape_cast %52 : vector<2xf32> to vector<2x1xf32>
    %54 = arith.addf %50, %53 : vector<2x1xf32>
    %c0_38 = arith.constant 0 : index
    %c0_39 = arith.constant 0 : index
    %55 = vector.load %arg8[%c0_38, %c0_39] : memref<2x1xf32, #tpu.memory_space<vmem>>, vector<2x1xf32>
    tpu.vector_store %arg8[%c0_38, %c0_39], %54 {strides = array<i32>} : memref<2x1xf32, #tpu.memory_space<vmem>>, vector<2x1xf32>,
    return
  }
  func.func @transform_0(%arg0: i32, %arg1: i32) -> (i32, i32) {
    %c1_i32 = arith.constant 1 : i32
    %0 = arith.muli %arg0, %c1_i32 : i32
    %1 = arith.addi %0, %arg1 : i32
    %c0_i32 = arith.constant 0 : i32
    %2 = arith.minsi %1, %c0_i32 : i32
    %c0_i32_0 = arith.constant 0 : i32
    %c0_i32_1 = arith.constant 0 : i32
    return %2, %c0_i32_0 : i32, i32
  }
  func.func @transform_1(%arg0: i32, %arg1: i32) -> (i32, i32) {
    %c1_i32 = arith.constant 1 : i32
    %0 = arith.muli %arg0, %c1_i32 : i32
    %1 = arith.addi %0, %arg1 : i32
    %c0_i32 = arith.constant 0 : i32
    %2 = arith.minsi %1, %c0_i32 : i32
    %c0_i32_0 = arith.constant 0 : i32
    %c0_i32_1 = arith.constant 0 : i32
    return %2, %c0_i32_0 : i32, i32
  }
  func.func @transform_2(%arg0: i32, %arg1: i32) -> (i32, i32) {
    %c1_i32 = arith.constant 1 : i32
    %0 = arith.muli %arg0, %c1_i32 : i32
    %1 = arith.addi %0, %arg1 : i32
    %c0_i32 = arith.constant 0 : i32
    %2 = arith.minsi %1, %c0_i32 : i32
    %c0_i32_0 = arith.constant 0 : i32
    %c0_i32_1 = arith.constant 0 : i32
    return %2, %c0_i32_0 : i32, i32
  }
  func.func @transform_3(%arg0: i32, %arg1: i32) -> (i32, i32) {
    %c0_i32 = arith.constant 0 : i32
    %c0_i32_0 = arith.constant 0 : i32
    return %arg0, %c0_i32 : i32, i32
  }
  func.func @transform_4(%arg0: i32, %arg1: i32) -> (i32, i32) {
    %c0_i32 = arith.constant 0 : i32
    %c0_i32_0 = arith.constant 0 : i32
    return %arg0, %c0_i32 : i32, i32
  }
  func.func @transform_5(%arg0: i32, %arg1: i32) -> (i32, i32) {
    %c0_i32 = arith.constant 0 : i32
    %c0_i32_0 = arith.constant 0 : i32
    return %arg0, %c0_i32 : i32, i32
  }
  func.func @transform_6(%arg0: i32, %arg1: i32) -> (i32, i32) {
    %c0_i32 = arith.constant 0 : i32
    %c0_i32_0 = arith.constant 0 : i32
    return %arg0, %c0_i32 : i32, i32
  }
  func.func @transform_7(%arg0: i32, %arg1: i32) -> (i32, i32) {
    %c0_i32 = arith.constant 0 : i32
    %c0_i32_0 = arith.constant 0 : i32
    return %arg0, %c0_i32 : i32, i32
  }
  func.func @transform_8(%arg0: i32, %arg1: i32) -> (i32, i32) {
    %c0_i32 = arith.constant 0 : i32
    %c0_i32_0 = arith.constant 0 : i32
    return %arg0, %c0_i32 : i32, i32
  }
}

</mosaic_0001>

<bundles_post_ra>
// kernel: tpu_custom_call.1
= control target key start
LH: loop header
LB: loop body
LE: loop exit
PB: predicated region body
PF: predicated region fallthrough
CT: control target
= control target key end

     0   :  { %14 = vsyncpa [#allocation3], 0  ;;  %s464_s0 = inlined_call_operand.hbm [shape: f32[2,256], index: 0, kind: input, shape index: {}]   ;;  %s465_s1 = inlined_call_operand.hbm [shape: f32[2,256], index: 1, kind: input, shape index: {}]   ;;  %s466_s2 = inlined_call_operand.vmem [shape: f32[2,256], index: 2, kind: input, shape index: {}]   ;;  %s467_s3 = inlined_call_operand.vmem [shape: f32[2,1], index: 3, kind: output, shape index: {0}]   ;;  %s468_s4 = inlined_call_operand.vmem [shape: f32[2,1], index: 4, kind: output, shape index: {1}]   ;;  %s469_s5 = inlined_call_operand.vmem [shape: f32[2,1], index: 5, kind: output, shape index: {2}]   ;;  %s470_s6 = inlined_call_operand.vmem [shape: f32[2,1], index: 6, kind: output, shape index: {3}]   ;;  %s471_s7 = inlined_call_operand.vmem [shape: f32[2,1], index: 7, kind: output, shape index: {4}]   ;;  %s472_s8 = inlined_call_operand.vmem [shape: f32[2,1], index: 8, kind: output, shape index: {5}]  }
   0x1   :  { %15 = vsyncpa [#allocation5], 0  ;;  %s310_s27 = smov [#allocation2]   ;;  %s311_s29 = smov [#allocation4]  }
   0x2   :  { %s28_s28 = sshll.u32 %s310_s27, 4  ;;  %s44_s30 = sshll.u32 %s311_s29, 4  ;;  %s29_s28 = int_to_ptr.vmem [resolvable:$true] %s28_s28  ;;  %s45_s30 = int_to_ptr.vmem [resolvable:$true] %s44_s30 }
   0x3   :  { %s262_s11 = scalar_lea.hbm %s464_s0, 64 }
   0x4   :  { %p263_p0 = scmp.ne.s32.totalorder %s464_s0, %s262_s11  ;;  %p266_p1 = scmp.lt.u32.totalorder %s262_s11, %s464_s0 }
   0x6   :  { %p268_p2 = pnand %p266_p1, %p263_p0 }
   0x8   :  { %271 = shalt.err (!%p268_p2)
}
   0x9   :  { %s272_s16 = scalar_lea.vmem %s29_s28, 64  ;;  %p277_p4 = scmp.lt.s32.totalorder %s29_s28, %s29_s28 }
   0xa   :  { %p273_p3 = scmp.ne.s32.totalorder %s29_s28, %s272_s16  ;;  %p278_p5 = scmp.lt.s32.totalorder %s272_s16, %s272_s16 }
   0xc   :  { %p279_p6 = por %p278_p5, %p277_p4 }
   0xe   :  { %p280_p7 = pnand %p279_p6, %p273_p3 }
  0x10   :  { %283 = shalt.err (!%p280_p7)
}
  0x11   :  { %31 = dma.hbm_to_vmem [thread:$0]  %s464_s0, 64, %s29_s28, [#allocation3]  }
  0x12   :  { %s284_s21 = scalar_lea.hbm %s465_s1, 64 }
  0x13   :  { %p285_p8 = scmp.ne.s32.totalorder %s465_s1, %s284_s21  ;;  %p288_p9 = scmp.lt.u32.totalorder %s284_s21, %s465_s1 }
  0x15   :  { %p290_p10 = pnand %p288_p9, %p285_p8 }
  0x17   :  { %293 = shalt.err (!%p290_p10)
}
  0x18   :  { %s294_s26 = scalar_lea.vmem %s45_s30, 64  ;;  %p299_p12 = scmp.lt.s32.totalorder %s45_s30, %s45_s30 }
  0x19   :  { %p295_p11 = scmp.ne.s32.totalorder %s45_s30, %s294_s26  ;;  %p300_p13 = scmp.lt.s32.totalorder %s294_s26, %s294_s26 }
  0x1b   :  { %p301_p0 = por %p300_p13, %p299_p12 }
  0x1d   :  { %p302_p1 = pnand %p301_p0, %p295_p11 }
  0x1f   :  { %305 = shalt.err (!%p302_p1)
}
  0x20   :  { %47 = dma.hbm_to_vmem [thread:$0]  %s465_s1, 64, %s45_s30, [#allocation5]  }
  0x21   :  { %306 = dma.done.wait [#allocation3], 64  }
  0x22   :  { %307 = vsyncadd [#allocation3], 4294967232 }
  0x23   :  { %308 = dma.done.wait [#allocation5], 64  }
  0x24   :  { %309 = vsyncadd [#allocation5], 4294967232  ;;  %v104_v0 = vld [vmem:[#allocation2] sm:$0xf]  ;;  %v105_v1 = vld [vmem:[#allocation4] sm:$0xf]  ;;  %v111_v6 = vlaneseq }
  0x25   :  { %v147_v2 = vadd.f32 1e-08, %v105_v1  ;;  %v150_v3 = vadd.f32 1e-08, %v104_v0  ;;  %v312_v4 = vmov 1983009808  }
  0x26   :  { %v109_v5 = vunpack.c.l.s4 %v312_v4  ;;  %v112_v8 = vshrl.u32 %v111_v6, 7  ;;  %vm118_vm0 = vcmask 1041408   ;;  %v103_v20 = vld [vmem:[%s466_s2] sm:$0xf]  ;;  %vm96_vm1 = vcmask 1024  }
  0x27   :  { %256 = vlog2.f32 %v147_v2  ;;  %v128_v23 = vmul.f32 %v103_v20, %v103_v20  ;;  %v313_v32 = vmov 0.0  }
  0x28   :  { %258 = vlog2.f32 %v150_v3  ;;  %v110_v7 = vunpack.c.0.s8 %v109_v5  ;;  %97 = vst.msk [vmem:[%s467_s3] sm:$0x3] %vm96_vm1, %v313_v32  ;;  %99 = vst.msk [vmem:[%s469_s5] sm:$0x3] %vm96_vm1, %v313_v32 }
  0x29   :  { %98 = vst.msk [vmem:[%s468_s4] sm:$0x3] %vm96_vm1, %v313_v32  ;;  %100 = vst.msk [vmem:[%s470_s6] sm:$0x3] %vm96_vm1, %v313_v32 }
  0x2a   :  { %v113_v12 = vsub.s32 %v110_v7, %v112_v8  ;;  %101 = vst.msk [vmem:[%s471_s7] sm:$0x3] %vm96_vm1, %v313_v32  ;;  %102 = vst.msk [vmem:[%s472_s8] sm:$0x3] %vm96_vm1, %v313_v32 }
  0x2c   :  { %v114_v21 = vrot.slane %v103_v20, %v113_v12  ;;  %v136_v26 = vrot.slane %v128_v23, %v113_v12 }
  0x2e   :  { %v115_v22 = vcombine.high %v114_v21, %v114_v21  ;;  %v119_v24 = vsel %vm118_vm0, %v114_v21, 0.0  ;;  %v137_v28 = vcombine.high %v136_v26, %v136_v26  ;;  %v140_v29 = vsel %vm118_vm0, %v136_v26, 0.0 }
  0x2f   :  { %v106_v54 = vld [vmem:[%s469_s5] sm:$0x3] }
  0x30   :  { %v120_v25 = vsel %vm118_vm0, %v115_v22, 0.0  ;;  %v141_v30 = vsel %vm118_vm0, %v137_v28, 0.0  ;;  %v206_v61 = vld [vmem:[%s470_s6] sm:$0x3] }
  0x31   :  { %v257_v9 = vpop.eup %256  ;;  %v121_v27 = vadd.f32 %v120_v25, %v119_v24  ;;  %v142_v31 = vadd.f32 %v141_v30, %v140_v29  ;;  %v127_v57 = vld [vmem:[%s472_s8] sm:$0x3] }
  0x32   :  { %v259_v10 = vpop.eup %258  ;;  %v149_v11 = vmul.f32 0.6931472, %v257_v9  ;;  %v184_v60 = vld [vmem:[%s471_s7] sm:$0x3] }
  0x33   :  { %v152_v13 = vmul.f32 0.6931472, %v259_v10  ;;  %122 = vadd.xlane.f32.xlu1 %v121_v27  ;;  %v198_v3 = vld [vmem:[%s468_s4] sm:$0x3] }
  0x34   :  { %v187_v8 = vld [vmem:[%s467_s3] sm:$0x3] }
  0x35   :  { %v153_v14 = vsub.f32 %v149_v11, %v152_v13 }
  0x37   :  { %v161_v15 = vrot.slane %v153_v14, %v113_v12  ;;  %143 = vadd.xlane.f32.xlu1 %v142_v31 }
  0x39   :  { %v162_v16 = vcombine.high %v161_v15, %v161_v15  ;;  %v165_v17 = vsel %vm118_vm0, %v161_v15, 0.0 }
  0x3b   :  { %v166_v18 = vsel %vm118_vm0, %v162_v16, 0.0 }
  0x3c   :  { %v167_v19 = vadd.f32 %v166_v18, %v165_v17 }
  0x3e   :  { %168 = vadd.xlane.f32.xlu0 %v167_v19 }
  0xc0   :  { %v123_v55 = vpop.xlane.xlu1 %122 }
  0xc1   :  { %v124_v56 = vadd.f32 %v123_v55, %v106_v54 }
  0xc3   :  { %126 = vst.msk [vmem:[%s469_s5] sm:$0x3] %vm96_vm1, %v124_v56 }
  0xc4   :  { %v144_v58 = vpop.xlane.xlu1 %143 }
  0xc5   :  { %v145_v59 = vadd.f32 %v144_v58, %v127_v57 }
  0xc7   :  { %146 = vst.msk [vmem:[%s472_s8] sm:$0x3] %vm96_vm1, %v145_v59 }
  0xcb   :  { %v169_v33 = vpop.xlane.xlu0 %168 }
  0xcc   :  { %v170_v34 = vmul.f32 0.00390625, %v169_v33 }
  0xce   :  { %v171_v35 = vsub.f32 %v170_v34, %v161_v15  ;;  %v172_v36 = vsub.f32 %v170_v34, %v162_v16 }
  0xd0   :  { %v173_v37 = vand.u32 2147483647, %v171_v35  ;;  %v174_v38 = vand.u32 2147483647, %v172_v36 }
  0xd2   :  { %v175_v39 = vmax.f32 %v173_v37, 1e-06  ;;  %v176_v40 = vmax.f32 %v174_v38, 1e-06 }
  0xd4   :  { %v177_v41 = vmul.f32 %v175_v39, %v175_v39  ;;  %v178_v42 = vmul.f32 %v176_v40, %v176_v40  ;;  %v207_v43 = vmul.f32 %v175_v39, %v114_v21  ;;  %v208_v44 = vmul.f32 %v176_v40, %v115_v22 }
  0xd5   :  { %v199_v51 = vsel %vm118_vm0, %v175_v39, 0.0  ;;  %v200_v52 = vsel %vm118_vm0, %v176_v40, 0.0 }
  0xd6   :  { %v179_v45 = vsel %vm118_vm0, %v177_v41, 0.0  ;;  %v180_v46 = vsel %vm118_vm0, %v178_v42, 0.0  ;;  %v209_v47 = vsel %vm118_vm0, %v207_v43, 0.0  ;;  %v210_v48 = vsel %vm118_vm0, %v208_v44, 0.0 }
  0xd7   :  { %v181_v49 = vadd.f32 %v180_v46, %v179_v45  ;;  %v211_v50 = vadd.f32 %v210_v48, %v209_v47  ;;  %v201_v53 = vadd.f32 %v200_v52, %v199_v51 }
  0xd9   :  { %182 = vadd.xlane.f32.xlu0 %v181_v49  ;;  %212 = vadd.xlane.f32.xlu1 %v211_v50 }
  0xdd   :  { %202 = vadd.xlane.f32.xlu0 %v201_v53 }
 0x166   :  { %v183_v62 = vpop.xlane.xlu0 %182  ;;  %v213_v63 = vpop.xlane.xlu1 %212 }
 0x167   :  { %v185_v0 = vadd.f32 %v184_v60, %v183_v62  ;;  %v188_v1 = vmul.f32 0.00390625, %v183_v62  ;;  %v214_v2 = vadd.f32 %v213_v63, %v206_v61 }
 0x169   :  { %186 = vst.msk [vmem:[%s471_s7] sm:$0x3] %vm96_vm1, %v185_v0  ;;  %260 = vrsqrt.f32 %v188_v1  ;;  %215 = vst.msk [vmem:[%s470_s6] sm:$0x3] %vm96_vm1, %v214_v2  ;;  %vm191_vm2 = vcmp.eq.f32.partialorder %v188_v1, inf  ;;  %v194_v9 = vand.u32 2147483648, %v188_v1 }
 0x16a   :  { %v203_v4 = vpop.xlane.xlu0 %202  ;;  %vm193_vm3 = vcmp.eq.f32.partialorder %v188_v1, 0.0 }
 0x16b   :  { %v204_v5 = vadd.f32 %v203_v4, %v198_v3 }
 0x16d   :  { %205 = vst.msk [vmem:[%s468_s4] sm:$0x3] %vm96_vm1, %v204_v5 }
 0x173   :  { %v261_v6 = vpop.eup %260 }
 0x174   :  { %v190_v7 = vmul.f32 %v261_v6, %v188_v1 }
 0x176   :  { %v192_v10 = vsel %vm191_vm2, %v188_v1, %v190_v7 }
 0x177   :  { %v195_v11 = vsel %vm193_vm3, %v194_v9, %v192_v10 }
 0x178   :  { %v196_v12 = vadd.f32 %v195_v11, %v187_v8 }
 0x17a   :  { %197 = vst.msk [vmem:[%s467_s3] sm:$0x3] %vm96_vm1, %v196_v12 }
 0x17b   :  { %240 = vsyncpa [#allocation3], 1 }
 0x17c   :  { %241 = vsyncpa [#allocation5], 1 }

</bundles_post_ra>
